<compile_context>
chip_gen: v6e
topology: v6e:2x2x1
jax: 0.10.0
libtpu: 0.0.40
codegen_flags: <defaults>
</compile_context>

<pallas_src>
import functools

import jax
import jax.numpy as jnp
from jax.experimental import pallas as pl
from jax.experimental.pallas import tpu as pltpu

_LANE = 128
_SUBLANE = 8


def _round_up(n, m):
    return (n + m - 1) // m * m


def _cdiv(a, b):
    return (a + b - 1) // b


def mlp_kernel(x_ref, w1_ref, w2_ref, w3_ref, b1_ref, b2_ref, b3_ref, o_ref):
    """One TILE_B-row slab of the fused 3-layer MLP: 3 MXU matmuls + VPU ReLUs."""
    wdt = w1_ref.dtype
    x = x_ref[...]

    # Cast activations to the weight dtype only at the MXU input (no-op for
    # f32); bias-add / ReLU stay in f32 (required on v5e's f32-only VPU).
    h = jnp.dot(x.astype(wdt), w1_ref[...],
                preferred_element_type=jnp.float32) + b1_ref[...]
    h = jnp.maximum(h, 0.0)

    h = jnp.dot(h.astype(wdt), w2_ref[...],
                preferred_element_type=jnp.float32) + b2_ref[...]
    h = jnp.maximum(h, 0.0)

    y = jnp.dot(h.astype(wdt), w3_ref[...],
                preferred_element_type=jnp.float32)
    out_w = o_ref.shape[-1]            # true out_size (static); drop padded lanes
    o_ref[...] = (y[:, :out_w] + b3_ref[...]).astype(o_ref.dtype)


def _default_use_bf16():
    """bf16 weights are the MXU fast path on v6e/v7x; keep f32 elsewhere."""
    try:
        kind = jax.devices()[0].device_kind.lower()
    except Exception:
        return False
    return any(t in kind for t in ("v6", "v7", "7x", "trillium"))


def pad_mlp_params(params, use_bf16_weights=None):
    """One-time packing of the MLP params for the kernel (hoisted out of the
    per-call path). Weights are zero-padded per feature dim to 128-lane
    multiples; biases stay f32. b3 is kept at the true out_size so the kernel
    and wrapper recover out_size statically from its shape."""
    if use_bf16_weights is None:
        use_bf16_weights = _default_use_bf16()
    w_dtype = jnp.bfloat16 if use_bf16_weights else jnp.float32

    w1, b1 = params["w1"], params["b1"]
    w2, b2 = params["w2"], params["b2"]
    w3, b3 = params["w3"], params["b3"]
    in_size, h1 = w1.shape
    h2 = w2.shape[1]
    out_size = w3.shape[1]

    p1 = _round_up(h1, _LANE)
    p2 = _round_up(h2, _LANE)
    po = _round_up(out_size, _LANE)

    # Zero padding + zero bias + ReLU keeps padded lanes at 0 through every
    # layer; padded output lanes are sliced off inside the kernel.
    w1p = jnp.zeros((in_size, p1), w_dtype).at[:, :h1].set(w1.astype(w_dtype))
    w2p = jnp.zeros((p1, p2), w_dtype).at[:h1, :h2].set(w2.astype(w_dtype))
    w3p = jnp.zeros((p2, po), w_dtype).at[:h2, :out_size].set(w3.astype(w_dtype))
    b1p = jnp.zeros((1, p1), jnp.float32).at[0, :h1].set(b1.astype(jnp.float32))
    b2p = jnp.zeros((1, p2), jnp.float32).at[0, :h2].set(b2.astype(jnp.float32))
    b3p = b3.astype(jnp.float32).reshape(1, out_size)   # unpadded -> encodes out_size

    return {"w1": w1p, "w2": w2p, "w3": w3p, "b1": b1p, "b2": b2p, "b3": b3p}


@functools.partial(jax.jit, static_argnames=("tile_b",))
def mlp_forward(x, padded_params, *, tile_b=1024):
    """x: (B, input_size) float32. padded_params: output of pad_mlp_params()."""
    w1p, w2p, w3p = padded_params["w1"], padded_params["w2"], padded_params["w3"]
    b1p, b2p, b3p = padded_params["b1"], padded_params["b2"], padded_params["b3"]

    B, in_size = x.shape
    assert w1p.shape[0] == in_size, "x feature dim must match w1"
    out_size = b3p.shape[1]
    p1, p2, po = w1p.shape[1], w2p.shape[1], w3p.shape[1]

    # Guard the "weights resident in VMEM" design: past ~O(2-4K) hidden dims
    # this stops fitting the scoped-VMEM budget (esp. v7x's 64 MiB physical).
    weight_bytes = w1p.nbytes + w2p.nbytes + w3p.nbytes
    if weight_bytes > 24 * (1 << 20):
        # TODO(synk): add a K/N-tiled grid ("arbitrary" reduction axis + f32
        # accumulator scratch) fallback for very wide hidden layers.
        raise ValueError("hidden dims too large for the VMEM-resident-weight kernel")

    # Batch tiling: pad only to a sublane multiple per tile (no near-doubling
    # on awkward B), and force >= 2 grid steps when possible so the "parallel"
    # axis can split across v7x's two TensorCores.
    tile_b = max(_SUBLANE, _round_up(tile_b, _SUBLANE))
    b8 = _round_up(B, _SUBLANE)
    n_tiles = _cdiv(b8, tile_b)
    if n_tiles == 1 and b8 >= 2 * _SUBLANE:
        n_tiles = 2
    tb = _round_up(_cdiv(b8, n_tiles), _SUBLANE)
    b_pad = n_tiles * tb
    x_pad = x if b_pad == B else jnp.pad(x, ((0, b_pad - B), (0, 0)))

    # Only override the scoped-VMEM limit when a large tile_b sweep needs it
    # (v5e's scoped default is 16 MiB); otherwise leave the compiler default.
    f32b = 4
    est = (2 * tb * (_round_up(in_size, _LANE) + po) * f32b        # x/out double-buffers
           + weight_bytes + b1p.nbytes + b2p.nbytes + b3p.nbytes
           + 3 * tb * max(p1, p2, po) * f32b)                      # live intermediates
    cp_kwargs = dict(dimension_semantics=("parallel",))            # megacore on v7x
    if est > 12 * (1 << 20):
        cp_kwargs["vmem_limit_bytes"] = int(min(max(2 * est, 32 << 20), 64 << 20))

    out = pl.pallas_call(
        mlp_kernel,
        out_shape=jax.ShapeDtypeStruct((b_pad, out_size), x.dtype),
        grid=(n_tiles,),
        in_specs=[
            pl.BlockSpec((tb, in_size), lambda i: (i, 0)),   # streamed x slab
            pl.BlockSpec(w1p.shape, lambda i: (0, 0)),       # VMEM-resident weights
            pl.BlockSpec(w2p.shape, lambda i: (0, 0)),
            pl.BlockSpec(w3p.shape, lambda i: (0, 0)),
            pl.BlockSpec(b1p.shape, lambda i: (0, 0)),       # VMEM-resident biases
            pl.BlockSpec(b2p.shape, lambda i: (0, 0)),
            pl.BlockSpec(b3p.shape, lambda i: (0, 0)),
        ],
        out_specs=pl.BlockSpec((tb, out_size), lambda i: (i, 0)),  # narrow writeback
        compiler_params=pltpu.CompilerParams(**cp_kwargs),
    )(x_pad, w1p, w2p, w3p, b1p, b2p, b3p)

    return out[:B]


def init_mlp_params(key, input_size, hidden_units=(16, 16), output_size=1):
    """Deterministic init mimicking PyTorch's Linear init (uniform +/- 1/sqrt(fan_in))."""
    sizes = [input_size, *hidden_units, output_size]
    params = {}
    for i in range(len(sizes) - 1):
        fan_in, fan_out = sizes[i], sizes[i + 1]
        key, kw, kb = jax.random.split(key, 3)
        bound = 1.0 / jnp.sqrt(fan_in)
        params[f"w{i + 1}"] = jax.random.uniform(
            kw, (fan_in, fan_out), jnp.float32, -bound, bound)
        params[f"b{i + 1}"] = jax.random.uniform(
            kb, (fan_out,), jnp.float32, -bound, bound)
    return params


def mlp_reference(x, params):
    h = jnp.maximum(x @ params["w1"] + params["b1"], 0.0)
    h = jnp.maximum(h @ params["w2"] + params["b2"], 0.0)
    return h @ params["w3"] + params["b3"]


if __name__ == "__main__":
    key = jax.random.PRNGKey(0)
    k_x, k_x2, k_x3, k_p = jax.random.split(key, 4)

    batch, input_size = 8, 32
    params = init_mlp_params(k_p, input_size, hidden_units=(16, 16), output_size=1)

    # f32 weights: strict (1e-5) match against the pure-JAX reference.
    padded_f32 = pad_mlp_params(params, use_bf16_weights=False)

    x = jax.random.normal(k_x, (batch, input_size), dtype=jnp.float32)
    out = jax.block_until_ready(mlp_forward(x, padded_f32))
    ref = mlp_reference(x, params)
    assert out.shape == (batch, 1)
    assert jnp.allclose(out, ref, atol=1e-5, rtol=1e-5)

    # Batch-padding path (B not a multiple of the sublane/tile).
    x2 = jax.random.normal(k_x2, (10, input_size), dtype=jnp.float32)
    out2 = jax.block_until_ready(mlp_forward(x2, padded_f32))
    ref2 = mlp_reference(x2, params)
    assert out2.shape == (10, 1)
    assert jnp.allclose(out2, ref2, atol=1e-5, rtol=1e-5)

    # Multi-tile path (grid >= 2: exercises the v7x megacore split; harmless on v5e/v6e).
    x3 = jax.random.normal(k_x3, (260, input_size), dtype=jnp.float32)
    out3 = jax.block_until_ready(mlp_forward(x3, padded_f32))
    ref3 = mlp_reference(x3, params)
    assert out3.shape == (260, 1)
    assert jnp.allclose(out3, ref3, atol=1e-5, rtol=1e-5)

    # bf16-weight MXU fast path (the default on v6e/v7x); looser tolerance expected.
    padded_bf16 = pad_mlp_params(params, use_bf16_weights=True)
    out_bf16 = jax.block_until_ready(mlp_forward(x, padded_bf16))
    assert out_bf16.shape == (batch, 1)
    assert jnp.allclose(out_bf16, ref, atol=5e-2, rtol=5e-2)

    print("KERNEL_OK")
</pallas_src>

<mosaic_0001>
module attributes {stable_mosaic.version = 11 : i64} {
  func.func @mlp_kernel(%arg0: i32, %arg1: memref<8x32xf32, #tpu.memory_space<vmem>>, %arg2: memref<32x128xf32, #tpu.memory_space<vmem>>, %arg3: memref<128x128xf32, #tpu.memory_space<vmem>>, %arg4: memref<128x128xf32, #tpu.memory_space<vmem>>, %arg5: memref<1x128xf32, #tpu.memory_space<vmem>>, %arg6: memref<1x128xf32, #tpu.memory_space<vmem>>, %arg7: memref<1x1xf32, #tpu.memory_space<vmem>>, %arg8: memref<8x1xf32, #tpu.memory_space<vmem>>) attributes {dimension_semantics = [#tpu.dimension_semantics<parallel>], iteration_bounds = array<i64: 1>, scalar_prefetch = 0 : i64, scratch_operands = 0 : i64, tpu.core_type = #tpu.core_type<tc>, window_params = [{transform_indices = @transform_0, window_bounds = array<i64: 8, 32>}, {pipeline_mode = #tpu.pipeline_mode<synchronous>, transform_indices = @transform_1, window_bounds = array<i64: 32, 128>}, {pipeline_mode = #tpu.pipeline_mode<synchronous>, transform_indices = @transform_2, window_bounds = array<i64: 128, 128>}, {pipeline_mode = #tpu.pipeline_mode<synchronous>, transform_indices = @transform_3, window_bounds = array<i64: 128, 128>}, {pipeline_mode = #tpu.pipeline_mode<synchronous>, transform_indices = @transform_4, window_bounds = array<i64: 1, 128>}, {pipeline_mode = #tpu.pipeline_mode<synchronous>, transform_indices = @transform_5, window_bounds = array<i64: 1, 128>}, {pipeline_mode = #tpu.pipeline_mode<synchronous>, transform_indices = @transform_6, window_bounds = array<i64: 1, 1>}, {transform_indices = @transform_7, window_bounds = array<i64: 8, 1>}]} {
    %c0 = arith.constant 0 : index
    %c0_0 = arith.constant 0 : index
    %0 = vector.load %arg1[%c0, %c0_0] : memref<8x32xf32, #tpu.memory_space<vmem>>, vector<8x32xf32>
    %c0_1 = arith.constant 0 : index
    %c0_2 = arith.constant 0 : index
    %1 = vector.load %arg2[%c0_1, %c0_2] : memref<32x128xf32, #tpu.memory_space<vmem>>, vector<32x128xf32>
    %cst = arith.constant dense<0.000000e+00> : vector<8x128xf32>
    %2 = tpu.matmul %0, %1, %cst {dimension_numbers = #tpu.dot_dimension_numbers<[1], [0], [0], [1], [0, 0, 1, 1], [], []>} : vector<8x32xf32>, vector<32x128xf32>, vector<8x128xf32> -> vector<8x128xf32>
    %c0_3 = arith.constant 0 : index
    %c0_4 = arith.constant 0 : index
    %3 = vector.load %arg5[%c0_3, %c0_4] : memref<1x128xf32, #tpu.memory_space<vmem>>, vector<1x128xf32>
    %4 = vector.broadcast %3 : vector<1x128xf32> to vector<8x128xf32>
    %5 = arith.addf %2, %4 : vector<8x128xf32>
    %cst_5 = arith.constant 0.000000e+00 : f32
    %6 = vector.broadcast %cst_5 : f32 to vector<8x128xf32>
    %7 = arith.maximumf %5, %6 : vector<8x128xf32>
    %c0_6 = arith.constant 0 : index
    %c0_7 = arith.constant 0 : index
    %8 = vector.load %arg3[%c0_6, %c0_7] : memref<128x128xf32, #tpu.memory_space<vmem>>, vector<128x128xf32>
    %cst_8 = arith.constant dense<0.000000e+00> : vector<8x128xf32>
    %9 = tpu.matmul %7, %8, %cst_8 {dimension_numbers = #tpu.dot_dimension_numbers<[1], [0], [0], [1], [0, 0, 1, 1], [], []>} : vector<8x128xf32>, vector<128x128xf32>, vector<8x128xf32> -> vector<8x128xf32>
    %c0_9 = arith.constant 0 : index
    %c0_10 = arith.constant 0 : index
    %10 = vector.load %arg6[%c0_9, %c0_10] : memref<1x128xf32, #tpu.memory_space<vmem>>, vector<1x128xf32>
    %11 = vector.broadcast %10 : vector<1x128xf32> to vector<8x128xf32>
    %12 = arith.addf %9, %11 : vector<8x128xf32>
    %cst_11 = arith.constant 0.000000e+00 : f32
    %13 = vector.broadcast %cst_11 : f32 to vector<8x128xf32>
    %14 = arith.maximumf %12, %13 : vector<8x128xf32>
    %c0_12 = arith.constant 0 : index
    %c0_13 = arith.constant 0 : index
    %15 = vector.load %arg4[%c0_12, %c0_13] : memref<128x128xf32, #tpu.memory_space<vmem>>, vector<128x128xf32>
    %cst_14 = arith.constant dense<0.000000e+00> : vector<8x128xf32>
    %16 = tpu.matmul %14, %15, %cst_14 {dimension_numbers = #tpu.dot_dimension_numbers<[1], [0], [0], [1], [0, 0, 1, 1], [], []>} : vector<8x128xf32>, vector<128x128xf32>, vector<8x128xf32> -> vector<8x128xf32>
    %17 = vector.extract_strided_slice %16 {offsets = [0, 0], sizes = [8, 1], strides = [1, 1]} : vector<8x128xf32> to vector<8x1xf32>
    %c0_15 = arith.constant 0 : index
    %c0_16 = arith.constant 0 : index
    %18 = vector.load %arg7[%c0_15, %c0_16] : memref<1x1xf32, #tpu.memory_space<vmem>>, vector<1x1xf32>
    %19 = vector.broadcast %18 : vector<1x1xf32> to vector<8x1xf32>
    %20 = arith.addf %17, %19 : vector<8x1xf32>
    %c0_17 = arith.constant 0 : index
    %c0_18 = arith.constant 0 : index
    %21 = vector.load %arg8[%c0_17, %c0_18] : memref<8x1xf32, #tpu.memory_space<vmem>>, vector<8x1xf32>
    tpu.vector_store %arg8[%c0_17, %c0_18], %20 {strides = array<i32>} : memref<8x1xf32, #tpu.memory_space<vmem>>, vector<8x1xf32>,
    return
  }
  func.func @transform_0(%arg0: i32) -> (i32, i32) {
    %c0_i32 = arith.constant 0 : i32
    %c0_i32_0 = arith.constant 0 : i32
    return %arg0, %c0_i32 : i32, i32
  }
  func.func @transform_1(%arg0: i32) -> (i32, i32) {
    %c0_i32 = arith.constant 0 : i32
    %c0_i32_0 = arith.constant 0 : i32
    %c0_i32_1 = arith.constant 0 : i32
    return %c0_i32, %c0_i32_0 : i32, i32
  }
  func.func @transform_2(%arg0: i32) -> (i32, i32) {
    %c0_i32 = arith.constant 0 : i32
    %c0_i32_0 = arith.constant 0 : i32
    %c0_i32_1 = arith.constant 0 : i32
    return %c0_i32, %c0_i32_0 : i32, i32
  }
  func.func @transform_3(%arg0: i32) -> (i32, i32) {
    %c0_i32 = arith.constant 0 : i32
    %c0_i32_0 = arith.constant 0 : i32
    %c0_i32_1 = arith.constant 0 : i32
    return %c0_i32, %c0_i32_0 : i32, i32
  }
  func.func @transform_4(%arg0: i32) -> (i32, i32) {
    %c0_i32 = arith.constant 0 : i32
    %c0_i32_0 = arith.constant 0 : i32
    %c0_i32_1 = arith.constant 0 : i32
    return %c0_i32, %c0_i32_0 : i32, i32
  }
  func.func @transform_5(%arg0: i32) -> (i32, i32) {
    %c0_i32 = arith.constant 0 : i32
    %c0_i32_0 = arith.constant 0 : i32
    %c0_i32_1 = arith.constant 0 : i32
    return %c0_i32, %c0_i32_0 : i32, i32
  }
  func.func @transform_6(%arg0: i32) -> (i32, i32) {
    %c0_i32 = arith.constant 0 : i32
    %c0_i32_0 = arith.constant 0 : i32
    %c0_i32_1 = arith.constant 0 : i32
    return %c0_i32, %c0_i32_0 : i32, i32
  }
  func.func @transform_7(%arg0: i32) -> (i32, i32) {
    %c0_i32 = arith.constant 0 : i32
    %c0_i32_0 = arith.constant 0 : i32
    return %arg0, %c0_i32 : i32, i32
  }
}

</mosaic_0001>

<bundles_post_ra>
// kernel: mlp_forward.1
= control target key start
LH: loop header
LB: loop body
LE: loop exit
PB: predicated region body
PF: predicated region fallthrough
CT: control target
= control target key end

     0   :  { %s706_s0 = inlined_call_operand.hbm [shape: f32[8,32], index: 0, kind: input, shape index: {}]   ;;  %s707_s1 = inlined_call_operand.hbm [shape: f32[32,128], index: 1, kind: input, shape index: {}]   ;;  %s708_s2 = inlined_call_operand.hbm [shape: f32[128,128], index: 2, kind: input, shape index: {}]   ;;  %s709_s3 = inlined_call_operand.hbm [shape: f32[128,128], index: 3, kind: input, shape index: {}]   ;;  %s710_s4 = inlined_call_operand.vmem [shape: f32[1,128], index: 4, kind: input, shape index: {}]   ;;  %s711_s5 = inlined_call_operand.vmem [shape: f32[1,128], index: 5, kind: input, shape index: {}]   ;;  %s712_s6 = inlined_call_operand.<no memory space> [shape: f32[1,1], index: 6, kind: input, shape index: {}]   ;;  %s713_s7 = inlined_call_operand.vmem [shape: f32[8,1], index: 7, kind: output, shape index: {}]  }
   0x1   :  { %v12_v0 = vstv %s712_s6 }
   0x2   :  { %13 = vst [vmem:[#allocation2] sm:$0x1] %v12_v0 }
   0x3   :  { %14 = vsyncpa [#allocation4], 0 }
   0x4   :  { %15 = vsyncpa [#allocation6], 0 }
   0x5   :  { %16 = vsyncpa [#allocation9], 0  ;;  %s583_s26 = smov [#allocation5]  }
   0x6   :  { %s32_s27 = sshll.u32 %s583_s26, 4  ;;  %s33_s27 = int_to_ptr.vmem [resolvable:$true] %s32_s27 }
   0x7   :  { %s505_s28 = scalar_lea.vmem %s33_s27, 512  ;;  %p510_p1 = scmp.lt.s32.totalorder %s33_s27, %s33_s27 }
   0x8   :  { %p506_p0 = scmp.ne.s32.totalorder %s33_s27, %s505_s28  ;;  %p511_p2 = scmp.lt.s32.totalorder %s505_s28, %s505_s28 }
   0xa   :  { %p512_p3 = por %p511_p2, %p510_p1 }
   0xc   :  { %p513_p4 = pnand %p512_p3, %p506_p0 }
   0xe   :  { %516 = shalt.err (!%p513_p4)
}
   0xf   :  { %s584_s29 = smov 128   ;;  %s585_s30 = smov 8  }
  0x10   :  { %38 = dma.hbm_to_vmem [thread:$0]  %s707_s1, 512, %s33_s27, [#allocation6], %s584_s29, %s584_s29, %s585_s30  }
  0x11   :  { %s586_s9 = smov [#allocation3]   ;;  %s587_s11 = smov [#allocation7]  }
  0x12   :  { %s23_s10 = sshll.u32 %s586_s9, 4  ;;  %s44_s12 = sshll.u32 %s587_s11, 4  ;;  %s24_s10 = int_to_ptr.vmem [resolvable:$true] %s23_s10  ;;  %s45_s12 = int_to_ptr.vmem [resolvable:$true] %s44_s12 }
  0x13   :  { %s525_s13 = scalar_lea.vmem %s24_s10, 128  ;;  %p530_p6 = scmp.lt.s32.totalorder %s24_s10, %s24_s10 }
  0x14   :  { %p526_p5 = scmp.ne.s32.totalorder %s24_s10, %s525_s13  ;;  %p531_p7 = scmp.lt.s32.totalorder %s525_s13, %s525_s13 }
  0x16   :  { %p532_p8 = por %p531_p7, %p530_p6 }
  0x18   :  { %p533_p9 = pnand %p532_p8, %p526_p5 }
  0x1a   :  { %536 = shalt.err (!%p533_p9)
}
  0x1b   :  { %26 = dma.hbm_to_vmem [thread:$0]  %s706_s0, 128, %s24_s10, [#allocation4]  }
  0x1c   :  { %s545_s16 = scalar_lea.vmem %s45_s12, 2048  ;;  %p550_p11 = scmp.lt.s32.totalorder %s45_s12, %s45_s12 }
  0x1d   :  { %p546_p10 = scmp.ne.s32.totalorder %s45_s12, %s545_s16  ;;  %p551_p12 = scmp.lt.s32.totalorder %s545_s16, %s545_s16 }
  0x1f   :  { %p552_p13 = por %p551_p12, %p550_p11 }
  0x21   :  { %p553_p0 = pnand %p552_p13, %p546_p10 }
  0x23   :  { %556 = shalt.err (!%p553_p0)
}
  0x24   :  { %50 = dma.hbm_to_vmem [thread:$0]  %s708_s2, 2048, %s45_s12, [#allocation6], %s584_s29, %s584_s29, %s585_s30  }
  0x25   :  { %s588_s18 = smov [#allocation8]  }
  0x26   :  { %s56_s19 = sshll.u32 %s588_s18, 4  ;;  %s57_s19 = int_to_ptr.vmem [resolvable:$true] %s56_s19 }
  0x27   :  { %s565_s20 = scalar_lea.vmem %s57_s19, 2048  ;;  %p570_p2 = scmp.lt.s32.totalorder %s57_s19, %s57_s19 }
  0x28   :  { %p566_p1 = scmp.ne.s32.totalorder %s57_s19, %s565_s20  ;;  %p571_p3 = scmp.lt.s32.totalorder %s565_s20, %s565_s20 }
  0x2a   :  { %p572_p4 = por %p571_p3, %p570_p2 }
  0x2c   :  { %p573_p5 = pnand %p572_p4, %p566_p1 }
  0x2e   :  { %576 = shalt.err (!%p573_p5)
}
  0x2f   :  { %62 = dma.hbm_to_vmem [thread:$0]  %s709_s3, 2048, %s57_s19, [#allocation9], %s584_s29, %s584_s29, %s585_s30  }
  0x30   :  { %577 = dma.done.wait [#allocation4], 128  }
  0x31   :  { %578 = vsyncadd [#allocation4], 4294967168 }
  0x32   :  { %579 = dma.done.wait [#allocation6], 2560  }
  0x33   :  { %580 = vsyncadd [#allocation6], 4294964736 }
  0x34   :  { %581 = dma.done.wait [#allocation9], 2048  }
  0x35   :  { %582 = vsyncadd [#allocation9], 4294965248  ;;  %v589_v1 = vmov 0.0   ;;  %vm590_vm0 = vmmov 0   ;;  %v85_v2 = vld [vmem:[#allocation5 + $0x18] sm:$0xff]  ;;  %v84_v3 = vld [vmem:[#allocation5 + $0x10] sm:$0xff] }
  0x36   :  { %408 = vmatprep.subr.mxu0 %v589_v1  ;;  %416 = vmatprep.mubr.msk.f32.mxu0 %vm590_vm0, %v589_v1  ;;  %v183_v4 = vld [vmem:[#allocation7 + $0x78] sm:$0xff]  ;;  %v83_v5 = vld [vmem:[#allocation5 + $0x8] sm:$0xff]  ;;  %v182_v6 = vld [vmem:[#allocation7 + $0x70] sm:$0xff]  ;;  %vm93_vm1 = vcmask 261120   ;;  %vm356_vm2 = vcmask 7168  }
  0x37   :  { %419 = vmatprep.subr.mxu1 %v589_v1  ;;  %451 = vmatprep.mubr.msk.f32.mxu1 %vm590_vm0, %v589_v1  ;;  %v181_v7 = vld [vmem:[#allocation7 + $0x68] sm:$0xff]  ;;  %v82_v8 = vld [vmem:[#allocation5] sm:$0xff]  ;;  %v81_v9 = vld [vmem:[#allocation3] sm:$0xff] }
  0x38   :  { %409 = vmatpush3.msra.mxu0 %v85_v2  ;;  %420 = vmatpush3.msra.mxu1 %v183_v4  ;;  %v180_v10 = vld [vmem:[#allocation7 + $0x60] sm:$0xff]  ;;  %v179_v11 = vld [vmem:[#allocation7 + $0x58] sm:$0xff]  ;;  %v178_v12 = vld [vmem:[#allocation7 + $0x50] sm:$0xff] }
  0x39   :  { %410 = vmatprep.subr.mxu0 %v589_v1  ;;  %421 = vmatprep.subr.mxu1 %v589_v1  ;;  %v177_v13 = vld [vmem:[#allocation7 + $0x48] sm:$0xff]  ;;  %v176_v14 = vld [vmem:[#allocation7 + $0x40] sm:$0xff]  ;;  %v175_v15 = vld [vmem:[#allocation7 + $0x38] sm:$0xff] }
  0x3a   :  { %411 = vmatpush3.msra.mxu0 %v84_v3  ;;  %422 = vmatpush3.msra.mxu1 %v182_v6  ;;  %v174_v16 = vld [vmem:[#allocation7 + $0x30] sm:$0xff]  ;;  %v173_v17 = vld [vmem:[#allocation7 + $0x28] sm:$0xff]  ;;  %v172_v18 = vld [vmem:[#allocation7 + $0x20] sm:$0xff] }
  0x3b   :  { %412 = vmatprep.subr.mxu0 %v589_v1  ;;  %423 = vmatprep.subr.mxu1 %v589_v1  ;;  %v171_v19 = vld [vmem:[#allocation7 + $0x18] sm:$0xff]  ;;  %v170_v20 = vld [vmem:[#allocation7 + $0x10] sm:$0xff]  ;;  %v169_v21 = vld [vmem:[#allocation7 + $0x8] sm:$0xff] }
  0x3c   :  { %413 = vmatpush3.msra.mxu0 %v83_v5  ;;  %424 = vmatpush3.msra.mxu1 %v181_v7  ;;  %v168_v22 = vld [vmem:[#allocation7] sm:$0xff]  ;;  %v277_v23 = vld [vmem:[#allocation8 + $0x78] sm:$0xff]  ;;  %v276_v24 = vld [vmem:[#allocation8 + $0x70] sm:$0xff] }
  0x3d   :  { %414 = vmatprep.subr.mxu0 %v589_v1  ;;  %425 = vmatprep.subr.mxu1 %v589_v1  ;;  %v275_v25 = vld [vmem:[#allocation8 + $0x68] sm:$0xff]  ;;  %v274_v26 = vld [vmem:[#allocation8 + $0x60] sm:$0xff]  ;;  %v273_v27 = vld [vmem:[#allocation8 + $0x58] sm:$0xff] }
  0x3e   :  { %415 = vmatpush3.msra.mxu0 %v82_v8  ;;  %426 = vmatpush3.msra.mxu1 %v180_v10  ;;  %v272_v28 = vld [vmem:[#allocation8 + $0x50] sm:$0xff]  ;;  %v271_v29 = vld [vmem:[#allocation8 + $0x48] sm:$0xff]  ;;  %v270_v30 = vld [vmem:[#allocation8 + $0x40] sm:$0xff] }
  0x3f   :  { %417 = vmatmul.mubr.msk.f32.vlgmr.msra.gmra.mxu0 %vm93_vm1, %v81_v9  ;;  %427 = vmatprep.subr.mxu1 %v589_v1  ;;  %v269_v31 = vld [vmem:[#allocation8 + $0x38] sm:$0xff]  ;;  %v268_v32 = vld [vmem:[#allocation8 + $0x30] sm:$0xff]  ;;  %v267_v33 = vld [vmem:[#allocation8 + $0x28] sm:$0xff] }
  0x40   :  { %454 = vmatprep.subr.mxu0 %v589_v1  ;;  %428 = vmatpush3.msra.mxu1 %v179_v11  ;;  %v266_v34 = vld [vmem:[#allocation8 + $0x20] sm:$0xff]  ;;  %v265_v35 = vld [vmem:[#allocation8 + $0x18] sm:$0xff]  ;;  %v365_v36 = vld [vmem:[%s710_s4] ss:$0 sm:$0xff] }
  0x41   :  { %486 = vmatprep.mubr.msk.f32.mxu0 %vm590_vm0, %v589_v1  ;;  %429 = vmatprep.subr.mxu1 %v589_v1  ;;  %v264_v41 = vld [vmem:[#allocation8 + $0x10] sm:$0xff]  ;;  %v263_v42 = vld [vmem:[#allocation8 + $0x8] sm:$0xff]  ;;  %v262_v43 = vld [vmem:[#allocation8] sm:$0xff] }
  0x42   :  { %430 = vmatpush3.msra.mxu1 %v178_v12  ;;  %455 = vmatpush3.msra.mxu0 %v277_v23  ;;  %v367_v44 = vld [vmem:[%s711_s5] ss:$0 sm:$0xff] }
  0x43   :  { %431 = vmatprep.subr.mxu1 %v589_v1  ;;  %456 = vmatprep.subr.mxu0 %v589_v1  ;;  %v368_v49 = vld [vmem:[#allocation2] ss:$0 sm:$0xff] }
  0x44   :  { %432 = vmatpush3.msra.mxu1 %v177_v13  ;;  %457 = vmatpush3.msra.mxu0 %v276_v24 }
  0x45   :  { %433 = vmatprep.subr.mxu1 %v589_v1  ;;  %458 = vmatprep.subr.mxu0 %v589_v1 }
  0x46   :  { %434 = vmatpush3.msra.mxu1 %v176_v14  ;;  %459 = vmatpush3.msra.mxu0 %v275_v25 }
  0x47   :  { %435 = vmatprep.subr.mxu1 %v589_v1  ;;  %460 = vmatprep.subr.mxu0 %v589_v1 }
  0x48   :  { %436 = vmatpush3.msra.mxu1 %v175_v15  ;;  %461 = vmatpush3.msra.mxu0 %v274_v26 }
  0x49   :  { %437 = vmatprep.subr.mxu1 %v589_v1  ;;  %462 = vmatprep.subr.mxu0 %v589_v1 }
  0x4a   :  { %438 = vmatpush3.msra.mxu1 %v174_v16  ;;  %463 = vmatpush3.msra.mxu0 %v273_v27 }
  0x4b   :  { %439 = vmatprep.subr.mxu1 %v589_v1  ;;  %464 = vmatprep.subr.mxu0 %v589_v1 }
  0x4c   :  { %440 = vmatpush3.msra.mxu1 %v173_v17  ;;  %465 = vmatpush3.msra.mxu0 %v272_v28 }
  0x4d   :  { %441 = vmatprep.subr.mxu1 %v589_v1  ;;  %466 = vmatprep.subr.mxu0 %v589_v1 }
  0x4e   :  { %442 = vmatpush3.msra.mxu1 %v172_v18  ;;  %467 = vmatpush3.msra.mxu0 %v271_v29 }
  0x4f   :  { %443 = vmatprep.subr.mxu1 %v589_v1  ;;  %468 = vmatprep.subr.mxu0 %v589_v1 }
  0x50   :  { %444 = vmatpush3.msra.mxu1 %v171_v19  ;;  %469 = vmatpush3.msra.mxu0 %v270_v30 }
  0x51   :  { %445 = vmatprep.subr.mxu1 %v589_v1  ;;  %470 = vmatprep.subr.mxu0 %v589_v1 }
  0x52   :  { %446 = vmatpush3.msra.mxu1 %v170_v20  ;;  %471 = vmatpush3.msra.mxu0 %v269_v31 }
  0x53   :  { %447 = vmatprep.subr.mxu1 %v589_v1  ;;  %472 = vmatprep.subr.mxu0 %v589_v1 }
  0x54   :  { %448 = vmatpush3.msra.mxu1 %v169_v21  ;;  %473 = vmatpush3.msra.mxu0 %v268_v32 }
  0x55   :  { %449 = vmatprep.subr.mxu1 %v589_v1  ;;  %474 = vmatprep.subr.mxu0 %v589_v1 }
  0x56   :  { %450 = vmatpush3.msra.mxu1 %v168_v22  ;;  %475 = vmatpush3.msra.mxu0 %v267_v33 }
  0x57   :  { %476 = vmatprep.subr.mxu0 %v589_v1 }
  0x58   :  { %477 = vmatpush3.msra.mxu0 %v266_v34 }
  0x59   :  { %478 = vmatprep.subr.mxu0 %v589_v1 }
  0x5a   :  { %479 = vmatpush3.msra.mxu0 %v265_v35 }
  0x5b   :  { %480 = vmatprep.subr.mxu0 %v589_v1 }
  0x5c   :  { %481 = vmatpush3.msra.mxu0 %v264_v41 }
  0x5d   :  { %482 = vmatprep.subr.mxu0 %v589_v1 }
  0x5e   :  { %483 = vmatpush3.msra.mxu0 %v263_v42 }
  0x5f   :  { %484 = vmatprep.subr.mxu0 %v589_v1 }
  0x60   :  { %485 = vmatpush3.msra.mxu0 %v262_v43 }
  0xff   :  { %v163_v37 = vpop.f32.mrf.mxu0 }
 0x100   :  { %v164_v38 = vadd.f32 %v365_v36, %v163_v37 }
 0x101   :  { %v418_v39 = vpop.f32.mrf.mxu0 }
 0x102   :  { %v167_v40 = vmax.f32 %v164_v38, 0.0 }
 0x104   :  { %452 = vmatmul.mubr.f32.vlgmr.msra.gmra.mxu1 %v167_v40 }
 0x1c4   :  { %v257_v45 = vpop.f32.mrf.mxu1 }
 0x1c5   :  { %v258_v46 = vadd.f32 %v367_v44, %v257_v45 }
 0x1c6   :  { %v453_v47 = vpop.f32.mrf.mxu1 }
 0x1c7   :  { %v261_v48 = vmax.f32 %v258_v46, 0.0 }
 0x1c9   :  { %487 = vmatmul.mubr.f32.vlgmr.msra.gmra.mxu0 %v261_v48 }
 0x289   :  { %v344_v50 = vpop.f32.mrf.mxu0 }
 0x28a   :  { %v355_v51 = vadd.f32 %v368_v49, %v344_v50 }
 0x28b   :  { %v488_v52 = vpop.f32.mrf.mxu0 }
 0x28c   :  { %357 = vst.msk [vmem:[%s713_s7] sm:$0xff] %vm356_vm2, %v355_v51 }
 0x28d   :  { %362 = vsyncpa [#allocation4], 1 }
 0x28e   :  { %363 = vsyncpa [#allocation6], 1 }
 0x28f   :  { %364 = vsyncpa [#allocation9], 1 }

</bundles_post_ra>
